<compile_context>
chip_gen: v6e
topology: v6e:2x2x1
jax: 0.10.0
libtpu: 0.0.40
codegen_flags: <defaults>
</compile_context>

<pallas_src>
import functools

import jax
import jax.numpy as jnp
from jax.experimental import pallas as pl
from jax.experimental.pallas import tpu as pltpu


def _rmsnorm_kernel(x_ref, w_ref, o_ref, *, eps, hidden_size):
    # x_ref: (tile_rows, Hp), w_ref: (1, Hp), o_ref: (tile_rows, Hp)
    x = x_ref[...].astype(jnp.float32)                       # compute in f32
    ssq = jnp.sum(x * x, axis=-1, keepdims=True)
    var = ssq * (1.0 / hidden_size)                          # divide by TRUE H (padding-safe)
    inv_rms = jax.lax.rsqrt(var + eps)
    # Weight multiply stays in f32 to match the PyTorch module (RmsNorm on f32
    # inputs with an f32 weight, cast back afterwards).
    y = x * inv_rms * w_ref[...].astype(jnp.float32)
    o_ref[...] = y.astype(o_ref.dtype)


def _round_up(x, m):
    return -(-x // m) * m


def _vmem_budget():
    """Generation-aware (budget_bytes, vmem_limit_bytes)."""
    try:
        cap = int(pltpu.get_tpu_info().vmem_capacity_bytes)
    except Exception:
        cap = 64 * 1024 * 1024  # conservative fallback (v7x per-TC VMEM)
    # ~1/5 of physical VMEM for the tile working set:
    #   128 MiB (v5e/v6e) -> ~25.6 MiB,  64 MiB (v7x) -> ~12.8 MiB.
    budget = max(4 * 1024 * 1024, cap // 5)
    # Scoped limit: above v5e's 16 MiB default, room for double buffers + temps,
    # and always below physical VMEM.
    vmem_limit = min(cap - 8 * 1024 * 1024, max(32 * 1024 * 1024, 2 * budget))
    return budget, vmem_limit


def _pick_tile_rows(n_rows, H, itemsize, budget_bytes,
                    target_tile_bytes=2 * 1024 * 1024, min_grid_steps=2):
    """Row tile (multiple of 16) sized by bytes, VMEM-budgeted, >=2 grid steps."""
    # Working set per row: 2x input + 2x output double buffers + ~3 f32 temps.
    per_row_ws = 4 * H * itemsize + 12 * H
    budget_rows = max(16, budget_bytes // max(per_row_ws, 1))
    # Aim for ~2 MiB of input per tile (HBM-bound; amortizes ~0.35us/step and
    # reaches ~85% of HBM roofline); bigger buys nothing on v5e/v6e.
    target_rows = max(16, _round_up(-(-target_tile_bytes // (H * itemsize)), 16))
    t = min(budget_rows, target_rows)
    # Keep >= min_grid_steps grid steps so both v7x TensorCores get work.
    t = min(t, _round_up(pl.cdiv(n_rows, min_grid_steps), 16))
    # Never exceed the (rounded-up) total row count.
    t = min(t, _round_up(n_rows, 16))
    t = max(16, t - (t % 16))  # bf16 sublane packing: multiple of 16
    return int(t)


def custom_rms_norm(hidden_states, weight, eps=1e-6, *, tile_rows=None):
    """JAX/Pallas equivalent of CustomRMSNorm.forward (non-NKI path)."""
    orig_shape = hidden_states.shape
    orig_dtype = hidden_states.dtype
    H = orig_shape[-1]
    assert weight.shape == (H,)

    x2d = hidden_states.reshape(-1, H)
    n_rows = x2d.shape[0]

    # Lane-dense output: pad hidden to a multiple of 128 if necessary (rare —
    # standard LLM hidden sizes already are). Padded lanes are zero in both x
    # and weight, and the mean divides by the true H, so numerics are unchanged.
    H_pad = _round_up(H, 128)
    w2d = weight.reshape(1, H)  # keep original dtype; cast happens in-kernel
    if H_pad != H:
        x2d = jnp.pad(x2d, ((0, 0), (0, H_pad - H)))
        w2d = jnp.pad(w2d, ((0, 0), (0, H_pad - H)))

    budget_bytes, vmem_limit = _vmem_budget()
    if tile_rows is None:
        tile_rows = _pick_tile_rows(
            n_rows, H_pad, jnp.dtype(orig_dtype).itemsize, budget_bytes)

    grid = (pl.cdiv(n_rows, tile_rows),)  # partial last block handled by Pallas

    out = pl.pallas_call(
        functools.partial(_rmsnorm_kernel, eps=eps, hidden_size=H),
        out_shape=jax.ShapeDtypeStruct((n_rows, H_pad), orig_dtype),
        grid_spec=pltpu.PrefetchScalarGridSpec(
            num_scalar_prefetch=0,
            grid=grid,
            in_specs=[
                # NOTE: if a bundle/xprof trace shows exposed DMA on v6e at this
                # tile size, sweep pipeline_mode=pl.Buffered(3) here.
                pl.BlockSpec((tile_rows, H_pad), lambda i: (i, 0)),
                pl.BlockSpec((1, H_pad), lambda i: (0, 0)),  # VMEM-resident weight
            ],
            out_specs=pl.BlockSpec((tile_rows, H_pad), lambda i: (i, 0)),
        ),
        compiler_params=pltpu.CompilerParams(
            dimension_semantics=("parallel",),   # shard row grid across v7x TCs
            vmem_limit_bytes=int(vmem_limit),
        ),
    )(x2d, w2d)

    if H_pad != H:
        out = out[:, :H]
    return out.reshape(orig_shape)


if __name__ == "__main__":
    key = jax.random.PRNGKey(0)
    B, S, H = 2, 8, 32
    x = jax.random.normal(key, (B, S, H), dtype=jnp.bfloat16)

    # Deterministic parameter init: nn.Parameter(ones(hidden_size)) -> f32 ones.
    weight = jnp.ones((H,), dtype=jnp.float32)
    eps = 1e-6

    out = custom_rms_norm(x, weight, eps)
    out = jax.block_until_ready(out)

    # Pure-JAX reference matching the PyTorch module (f32 compute incl. weight
    # multiply, then cast back to the input dtype).
    x32 = x.astype(jnp.float32)
    ref = (x32 * jax.lax.rsqrt(jnp.mean(x32 * x32, axis=-1, keepdims=True) + eps)
           * weight).astype(x.dtype)

    assert out.shape == x.shape and out.dtype == x.dtype
    assert jnp.allclose(out.astype(jnp.float32), ref.astype(jnp.float32),
                        atol=1e-2, rtol=1e-2)

    print("KERNEL_OK")
</pallas_src>

<mosaic_0001>
module attributes {stable_mosaic.version = 11 : i64} {
  func.func @_rmsnorm_kernel(%arg0: i32, %arg1: memref<16x128xbf16, #tpu.memory_space<vmem>>, %arg2: memref<1x128xf32, #tpu.memory_space<vmem>>, %arg3: memref<16x128xbf16, #tpu.memory_space<vmem>>) attributes {dimension_semantics = [#tpu.dimension_semantics<parallel>], iteration_bounds = array<i64: 1>, scalar_prefetch = 0 : i64, scratch_operands = 0 : i64, tpu.core_type = #tpu.core_type<tc>, window_params = [{transform_indices = @transform_0, window_bounds = array<i64: 16, 128>}, {pipeline_mode = #tpu.pipeline_mode<synchronous>, transform_indices = @transform_1, window_bounds = array<i64: 1, 128>}, {transform_indices = @transform_2, window_bounds = array<i64: 16, 128>}]} {
    %c0 = arith.constant 0 : index
    %c0_0 = arith.constant 0 : index
    %0 = vector.load %arg1[%c0, %c0_0] : memref<16x128xbf16, #tpu.memory_space<vmem>>, vector<16x128xbf16>
    %1 = arith.extf %0 : vector<16x128xbf16> to vector<16x128xf32>
    %2 = arith.mulf %1, %1 : vector<16x128xf32>
    %cst = arith.constant dense<0.000000e+00> : vector<16xf32>
    %3 = vector.multi_reduction <add>, %2, %cst [1] : vector<16x128xf32> to vector<16xf32>
    %4 = vector.shape_cast %3 : vector<16xf32> to vector<16x1xf32>
    %cst_1 = arith.constant 3.125000e-02 : f32
    %5 = vector.broadcast %cst_1 : f32 to vector<16x1xf32>
    %6 = arith.mulf %4, %5 : vector<16x1xf32>
    %cst_2 = arith.constant 9.99999997E-7 : f32
    %7 = vector.broadcast %cst_2 : f32 to vector<16x1xf32>
    %8 = arith.addf %6, %7 : vector<16x1xf32>
    %9 = math.rsqrt %8 : vector<16x1xf32>
    %10 = vector.broadcast %9 : vector<16x1xf32> to vector<16x128xf32>
    %11 = arith.mulf %1, %10 : vector<16x128xf32>
    %c0_3 = arith.constant 0 : index
    %c0_4 = arith.constant 0 : index
    %12 = vector.load %arg2[%c0_3, %c0_4] : memref<1x128xf32, #tpu.memory_space<vmem>>, vector<1x128xf32>
    %13 = vector.broadcast %12 : vector<1x128xf32> to vector<16x128xf32>
    %14 = arith.mulf %11, %13 : vector<16x128xf32>
    %15 = arith.truncf %14 : vector<16x128xf32> to vector<16x128xbf16>
    %c0_5 = arith.constant 0 : index
    %c0_6 = arith.constant 0 : index
    %16 = vector.load %arg3[%c0_5, %c0_6] : memref<16x128xbf16, #tpu.memory_space<vmem>>, vector<16x128xbf16>
    tpu.vector_store %arg3[%c0_5, %c0_6], %15 {strides = array<i32>} : memref<16x128xbf16, #tpu.memory_space<vmem>>, vector<16x128xbf16>,
    return
  }
  func.func @transform_0(%arg0: i32) -> (i32, i32) {
    %c0_i32 = arith.constant 0 : i32
    %c0_i32_0 = arith.constant 0 : i32
    return %arg0, %c0_i32 : i32, i32
  }
  func.func @transform_1(%arg0: i32) -> (i32, i32) {
    %c0_i32 = arith.constant 0 : i32
    %c0_i32_0 = arith.constant 0 : i32
    %c0_i32_1 = arith.constant 0 : i32
    return %c0_i32, %c0_i32_0 : i32, i32
  }
  func.func @transform_2(%arg0: i32) -> (i32, i32) {
    %c0_i32 = arith.constant 0 : i32
    %c0_i32_0 = arith.constant 0 : i32
    return %arg0, %c0_i32 : i32, i32
  }
}

</mosaic_0001>

<bundles_post_ra>
// kernel: tpu_custom_call.1
= control target key start
LH: loop header
LB: loop body
LE: loop exit
PB: predicated region body
PF: predicated region fallthrough
CT: control target
= control target key end

     0   :  { %7 = vsyncpa [#allocation3], 0  ;;  %s180_s0 = inlined_call_operand.hbm [shape: bf16[16,128], index: 0, kind: input, shape index: {}]   ;;  %s181_s1 = inlined_call_operand.vmem [shape: f32[1,128], index: 1, kind: input, shape index: {}]   ;;  %s182_s2 = inlined_call_operand.hbm [shape: bf16[16,128], index: 2, kind: output, shape index: {}]  }
   0x1   :  { %8 = vsyncpa [#allocation4], 0  ;;  %s146_s9 = smov [#allocation2]  }
   0x2   :  { %s14_s10 = sshll.u32 %s146_s9, 4  ;;  %s15_s10 = int_to_ptr.vmem [resolvable:$true] %s14_s10 }
   0x3   :  { %s110_s11 = scalar_lea.vmem %s15_s10, 128  ;;  %p115_p1 = scmp.lt.s32.totalorder %s15_s10, %s15_s10 }
   0x4   :  { %p111_p0 = scmp.ne.s32.totalorder %s15_s10, %s110_s11  ;;  %p116_p2 = scmp.lt.s32.totalorder %s110_s11, %s110_s11 }
   0x6   :  { %p117_p3 = por %p116_p2, %p115_p1 }
   0x8   :  { %p118_p4 = pnand %p117_p3, %p111_p0 }
   0xa   :  { %121 = shalt.err (!%p118_p4)
}
   0xb   :  { %s147_s12 = smov 64   ;;  %s148_s13 = smov 4  }
   0xc   :  { %20 = dma.hbm_to_vmem [thread:$0]  %s180_s0, 128, %s15_s10, [#allocation3], %s147_s12, %s147_s12, %s148_s13  }
   0xd   :  { %142 = dma.done.wait [#allocation3], 128  }
   0xe   :  { %143 = vsyncadd [#allocation3], 4294967168  ;;  %v86_v0 = vld [vmem:[#allocation2] sm:$0xff]   ;;  %s149_s17 = smov [#allocation5]  }
   0xf   :  { %v87_v1 = vunpack.c.l.bf16 %v86_v0  ;;  %v88_v2 = vunpack.c.h.bf16 %v86_v0  ;;  %v80_v14 = vld [vmem:[%s181_s1] ss:$0 sm:$0xff]  ;;  %s68_s18 = sshll.u32 %s149_s17, 4  ;;  %s69_s18 = int_to_ptr.vmem [resolvable:$true] %s68_s18 }
  0x10   :  { %s122_s19 = scalar_lea.vmem %s69_s18, 128  ;;  %p127_p6 = scmp.lt.s32.totalorder %s69_s18, %s69_s18 }
  0x11   :  { %v30_v3 = vmul.f32 %v87_v1, %v87_v1  ;;  %v31_v4 = vmul.f32 %v88_v2, %v88_v2  ;;  %p123_p5 = scmp.ne.s32.totalorder %s69_s18, %s122_s19  ;;  %p128_p7 = scmp.lt.s32.totalorder %s122_s19, %s122_s19 }
  0x13   :  { %32 = vadd.xlane.f32.xlu0 %v30_v3  ;;  %p129_p8 = por %p128_p7, %p127_p6 }
  0x15   :  { %p130_p9 = pnand %p129_p8, %p123_p5 }
  0x17   :  { %34 = vadd.xlane.f32.xlu0 %v31_v4 }
  0x9c   :  { %v33_v5 = vpop.xlane.xlu0 %32 }
  0x9d   :  { %v36_v6 = vmul.f32 0.03125, %v33_v5 }
  0x9f   :  { %v38_v7 = vadd.f32 1e-06, %v36_v6 }
  0xa0   :  { %v35_v8 = vpop.xlane.xlu0 %34 }
  0xa1   :  { %98 = vrsqrt.f32 %v38_v7  ;;  %v37_v9 = vmul.f32 0.03125, %v35_v8 }
  0xa3   :  { %v39_v10 = vadd.f32 1e-06, %v37_v9 }
  0xa5   :  { %100 = vrsqrt.f32 %v39_v10 }
  0xae   :  { %v99_v11 = vpop.eup %98 }
  0xaf   :  { %v42_v12 = vmul.f32 %v99_v11, %v87_v1 }
  0xb1   :  { %v51_v16 = vmul.f32 %v80_v14, %v42_v12 }
  0xb2   :  { %v101_v13 = vpop.eup %100 }
  0xb3   :  { %v43_v15 = vmul.f32 %v101_v13, %v88_v2 }
  0xb5   :  { %v52_v17 = vmul.f32 %v80_v14, %v43_v15 }
  0xb7   :  { %v92_v18 = vpack.c.bf16 %v52_v17, %v51_v16 }
  0xb9   :  { %93 = vst [vmem:[#allocation5] sm:$0xff] %v92_v18  }
  0xba   :  { %133 = shalt.err (!%p130_p9)
}
  0xbb   :  { %74 = dma.vmem_to_hbm [thread:$0]  %s69_s18, 128, %s182_s2, [#allocation4], %s147_s12, %s147_s12, %s148_s13  }
  0xbc   :  { %144 = dma.done.wait [#allocation4], 128  }
  0xbd   :  { %145 = vsyncadd [#allocation4], 4294967168 }
  0xbe   :  { %78 = vsyncpa [#allocation3], 1 }
  0xbf   :  { %79 = vsyncpa [#allocation4], 1 }

</bundles_post_ra>
